<compile_context>
chip_gen: v5e
topology: v5e:2x2
jax: 0.10.0
libtpu: 0.0.40
codegen_flags: <defaults>
</compile_context>

<pallas_src>
import jax
import jax.numpy as jnp
from jax.experimental import pallas as pl
from jax.experimental.pallas import tpu as pltpu


def _round_up(x: int, m: int) -> int:
    return ((x + m - 1) // m) * m


def _pool_kernel(f_ref, a_ref, of_ref, oa_ref):
    """f_ref : (KMAX, C, T)  slot-major transposed features; empty slots = -inf.
       a_ref : (KMAX, 4, T)  slot-major transposed [cnt*x, cnt*y, cnt*z, cnt]; empty = 0.
       of_ref: (C, T)        segment-max features (0 for padding columns).
       oa_ref: (4, T)        [centroid_x, centroid_y, centroid_z, count_sum]."""
    kmax = f_ref.shape[0]

    # Static unroll over the (small) KMAX slots: pure elementwise VALU work on
    # lane-dense (rows-on-lanes) tiles.  Empty slots carry the max / sum identity.
    mx = f_ref[0]
    ax = a_ref[0]
    for r in range(1, kmax):
        mx = jnp.maximum(mx, f_ref[r])
        ax = ax + a_ref[r]

    cs = ax[3:4, :]                 # summed counts            (1, T)
    has = cs > 0.0                  # real output voxel?       (1, T)
    inv = 1.0 / jnp.where(has, cs, 1.0)   # exact divide; padding columns -> 1/1

    of_ref[...] = jnp.where(has, mx, 0.0)          # zero padding columns
    oa_ref[0:3, :] = ax[0:3, :] * inv               # count-weighted centroid
    oa_ref[3:4, :] = cs                             # down_count


def strided_max_pool(cluster_idx, feats, points, count, n_out_pad, *,
                     kmax=8, block_rows=1024):
    """Forward of StridedMaxPoolLayer.

    cluster_idx: [N_in] int32, feats: [N_in, C], points: [N_in, 3], count: [N_in, 1].
    n_out_pad: static upper bound on the number of downsampled voxels.
    kmax: max inputs per output voxel (kernel_size**dim = 8 for 2/2/3).
    """
    n_in, c = feats.shape
    n_out_pad = int(n_out_pad)
    kmax = int(kmax)

    # ---- tile geometry: output voxels live on the 128-lane axis ---------------
    block_rows = max(128, (int(block_rows) // 128) * 128)
    t_out = min(block_rows, _round_up(n_out_pad, 128))
    # VMEM budget: double-buffered input blocks + output blocks, keep < ~24 MiB
    # (comfortable on v7x's 64 MiB part with the default 32 MiB scoped limit).
    per_col_bytes = 4 * 2 * ((kmax + 1) * (c + 4))
    t_cap = max(128, ((24 * 1024 * 1024) // per_col_bytes) // 128 * 128)
    t_out = min(t_out, t_cap)
    # Prefer >= 2 grid steps so v7x's two TensorCores both get work.
    if _round_up(n_out_pad, t_out) // t_out < 2 and t_out >= 256:
        t_out = _round_up(t_out // 2, 128)
    n_out_r = _round_up(n_out_pad, t_out)
    n_steps = n_out_r // t_out
    n_total = n_out_r + t_out          # last tile = dummy bucket, never visited

    idx = cluster_idx.reshape(-1).astype(jnp.int32)
    feats32 = feats.astype(jnp.float32)
    points32 = points.astype(jnp.float32)
    count32 = count.astype(jnp.float32).reshape(n_in, 1)

    # ---- JAX wrapper glue standing in for cm.stride_map bookkeeping -----------
    # TODO(synk): MinkowskiEngine's coordinate manager / stride_map (coordinate
    # hashing) has no Pallas equivalent; the per-cluster slot ranking + scatter
    # below is plain-JAX glue around the kernel.  A sorted-segment variant with
    # scalar-prefetched per-tile offsets would avoid the KMAX-slot expansion.
    order = jnp.argsort(idx)
    sidx = idx[order]
    slot_sorted = (jnp.arange(n_in, dtype=jnp.int32)
                   - jnp.searchsorted(sidx, sidx, side="left").astype(jnp.int32))
    slot = jnp.zeros((n_in,), jnp.int32).at[order].set(slot_sorted)

    # Rows with an out-of-range cluster id or slot overflow (> kmax inputs per
    # output voxel) are parked in the dummy tile and dropped instead of silently
    # corrupting a neighbouring voxel.
    ok = (idx >= 0) & (idx < n_out_pad) & (slot < kmax)
    sl = jnp.where(ok, slot, 0)
    col = jnp.where(ok, idx, n_out_r)          # first column of the dummy tile

    # Slot-major, transposed (lane-dense) dense layout.  No slice afterwards:
    # the grid simply never visits the trailing dummy tile.
    f_base = jnp.full((kmax, c, n_total), -jnp.inf, jnp.float32)
    a_base = jnp.zeros((kmax, 4, n_total), jnp.float32)
    aux = jnp.concatenate([count32 * points32, count32], axis=1)   # (N_in, 4)
    f_dense = f_base.at[sl, :, col].set(feats32)                   # (KMAX, C, n_total)
    a_dense = a_base.at[sl, :, col].set(aux)                       # (KMAX, 4, n_total)

    out_f, out_a = pl.pallas_call(
        _pool_kernel,
        out_shape=(jax.ShapeDtypeStruct((c, n_out_r), jnp.float32),
                   jax.ShapeDtypeStruct((4, n_out_r), jnp.float32)),
        grid=(n_steps,),
        in_specs=[pl.BlockSpec((kmax, c, t_out), lambda j: (0, 0, j)),
                  pl.BlockSpec((kmax, 4, t_out), lambda j: (0, 0, j))],
        out_specs=(pl.BlockSpec((c, t_out), lambda j: (0, j)),
                   pl.BlockSpec((4, t_out), lambda j: (0, j))),
        compiler_params=pltpu.CompilerParams(
            dimension_semantics=("parallel",),          # v7x: split over 2 TCs
            vmem_limit_bytes=32 * 1024 * 1024),
        cost_estimate=pl.CostEstimate(
            flops=int(2 * kmax * n_out_r * (c + 4)),
            transcendentals=int(n_out_r),
            bytes_accessed=int(4 * (kmax + 1) * (c + 4) * n_out_r)),
    )(f_dense, a_dense)

    down_feats = out_f[:, :n_out_pad].T          # (n_out_pad, C)
    down_points = out_a[0:3, :n_out_pad].T       # (n_out_pad, 3)
    down_count = out_a[3:4, :n_out_pad].T        # (n_out_pad, 1)
    return down_feats, down_points, down_count


if __name__ == "__main__":
    key = jax.random.PRNGKey(0)
    k1, k2, k3 = jax.random.split(key, 3)

    # Synthetic sparse tensor: all 64 voxels of a 4x4x4 grid (unique coords).
    N_IN, C = 64, 8
    g = jnp.arange(4)
    coords = jnp.stack(jnp.meshgrid(g, g, g, indexing="ij"), axis=-1)
    coords = coords.reshape(-1, 3).astype(jnp.int32)                     # [64, 3]

    feats = jax.random.normal(k1, (N_IN, C), dtype=jnp.float32)          # stensor.F
    points = coords.astype(jnp.float32) + \
        0.25 * jax.random.uniform(k2, (N_IN, 3), dtype=jnp.float32)      # continuous xyz
    count = 1.0 + jax.random.randint(k3, (N_IN, 1), 0, 5).astype(jnp.float32)

    # Cluster assignment = floor(coord / 2) (the stride-2 map).
    down_coords = coords // 2
    uniq, inv = jnp.unique(down_coords, axis=0, return_inverse=True)
    cluster_idx = inv.reshape(-1).astype(jnp.int32)                      # [N_in]
    n_out = int(uniq.shape[0])
    n_out_pad = N_IN  # static upper bound on number of downsampled voxels

    down_feats, down_points, down_count = strided_max_pool(
        cluster_idx, feats, points, count, n_out_pad)
    jax.block_until_ready((down_feats, down_points, down_count))

    # Pure-JAX reference (segment ops) for correctness on the valid rows.
    ref_max = jax.ops.segment_max(feats, cluster_idx, num_segments=n_out_pad)
    ref_wsum = jax.ops.segment_sum(count * points, cluster_idx, num_segments=n_out_pad)
    ref_csum = jax.ops.segment_sum(count, cluster_idx, num_segments=n_out_pad)
    ref_pts = ref_wsum[:n_out] / ref_csum[:n_out]

    assert down_feats.shape == (n_out_pad, C)
    assert down_points.shape == (n_out_pad, 3)
    assert down_count.shape == (n_out_pad, 1)
    assert jnp.allclose(down_feats[:n_out], ref_max[:n_out], atol=1e-5, rtol=1e-5)
    # exact divide in the kernel -> tight tolerance
    assert jnp.allclose(down_points[:n_out], ref_pts, atol=1e-5, rtol=1e-5)
    assert jnp.allclose(down_count[:n_out], ref_csum[:n_out], atol=1e-5, rtol=1e-5)
    # padding rows are zeroed
    assert jnp.allclose(down_count[n_out:], 0.0)
    assert jnp.allclose(down_feats[n_out:], 0.0)

    print("KERNEL_OK")
</pallas_src>

<mosaic_0001>
module attributes {stable_mosaic.version = 11 : i64} {
  func.func @_pool_kernel(%arg0: i32, %arg1: memref<8x8x128xf32, #tpu.memory_space<vmem>>, %arg2: memref<8x4x128xf32, #tpu.memory_space<vmem>>, %arg3: memref<8x128xf32, #tpu.memory_space<vmem>>, %arg4: memref<4x128xf32, #tpu.memory_space<vmem>>) attributes {dimension_semantics = [#tpu.dimension_semantics<parallel>], iteration_bounds = array<i64: 1>, scalar_prefetch = 0 : i64, scratch_operands = 0 : i64, tpu.core_type = #tpu.core_type<tc>, window_params = [{transform_indices = @transform_0, window_bounds = array<i64: 8, 8, 128>}, {transform_indices = @transform_1, window_bounds = array<i64: 8, 4, 128>}, {transform_indices = @transform_2, window_bounds = array<i64: 8, 128>}, {transform_indices = @transform_3, window_bounds = array<i64: 4, 128>}]} {
    %c0 = arith.constant 0 : index
    %c0_0 = arith.constant 0 : index
    %c0_1 = arith.constant 0 : index
    %0 = vector.load %arg1[%c0, %c0_0, %c0_1] : memref<8x8x128xf32, #tpu.memory_space<vmem>>, vector<1x8x128xf32>
    %1 = vector.shape_cast %0 : vector<1x8x128xf32> to vector<8x128xf32>
    %c0_2 = arith.constant 0 : index
    %c0_3 = arith.constant 0 : index
    %c0_4 = arith.constant 0 : index
    %2 = vector.load %arg2[%c0_2, %c0_3, %c0_4] : memref<8x4x128xf32, #tpu.memory_space<vmem>>, vector<1x4x128xf32>
    %3 = vector.shape_cast %2 : vector<1x4x128xf32> to vector<4x128xf32>
    %c1 = arith.constant 1 : index
    %c0_5 = arith.constant 0 : index
    %c0_6 = arith.constant 0 : index
    %4 = vector.load %arg1[%c1, %c0_5, %c0_6] : memref<8x8x128xf32, #tpu.memory_space<vmem>>, vector<1x8x128xf32>
    %5 = vector.shape_cast %4 : vector<1x8x128xf32> to vector<8x128xf32>
    %6 = arith.maximumf %1, %5 : vector<8x128xf32>
    %c1_7 = arith.constant 1 : index
    %c0_8 = arith.constant 0 : index
    %c0_9 = arith.constant 0 : index
    %7 = vector.load %arg2[%c1_7, %c0_8, %c0_9] : memref<8x4x128xf32, #tpu.memory_space<vmem>>, vector<1x4x128xf32>
    %8 = vector.shape_cast %7 : vector<1x4x128xf32> to vector<4x128xf32>
    %9 = arith.addf %3, %8 : vector<4x128xf32>
    %c2 = arith.constant 2 : index
    %c0_10 = arith.constant 0 : index
    %c0_11 = arith.constant 0 : index
    %10 = vector.load %arg1[%c2, %c0_10, %c0_11] : memref<8x8x128xf32, #tpu.memory_space<vmem>>, vector<1x8x128xf32>
    %11 = vector.shape_cast %10 : vector<1x8x128xf32> to vector<8x128xf32>
    %12 = arith.maximumf %6, %11 : vector<8x128xf32>
    %c2_12 = arith.constant 2 : index
    %c0_13 = arith.constant 0 : index
    %c0_14 = arith.constant 0 : index
    %13 = vector.load %arg2[%c2_12, %c0_13, %c0_14] : memref<8x4x128xf32, #tpu.memory_space<vmem>>, vector<1x4x128xf32>
    %14 = vector.shape_cast %13 : vector<1x4x128xf32> to vector<4x128xf32>
    %15 = arith.addf %9, %14 : vector<4x128xf32>
    %c3 = arith.constant 3 : index
    %c0_15 = arith.constant 0 : index
    %c0_16 = arith.constant 0 : index
    %16 = vector.load %arg1[%c3, %c0_15, %c0_16] : memref<8x8x128xf32, #tpu.memory_space<vmem>>, vector<1x8x128xf32>
    %17 = vector.shape_cast %16 : vector<1x8x128xf32> to vector<8x128xf32>
    %18 = arith.maximumf %12, %17 : vector<8x128xf32>
    %c3_17 = arith.constant 3 : index
    %c0_18 = arith.constant 0 : index
    %c0_19 = arith.constant 0 : index
    %19 = vector.load %arg2[%c3_17, %c0_18, %c0_19] : memref<8x4x128xf32, #tpu.memory_space<vmem>>, vector<1x4x128xf32>
    %20 = vector.shape_cast %19 : vector<1x4x128xf32> to vector<4x128xf32>
    %21 = arith.addf %15, %20 : vector<4x128xf32>
    %c4 = arith.constant 4 : index
    %c0_20 = arith.constant 0 : index
    %c0_21 = arith.constant 0 : index
    %22 = vector.load %arg1[%c4, %c0_20, %c0_21] : memref<8x8x128xf32, #tpu.memory_space<vmem>>, vector<1x8x128xf32>
    %23 = vector.shape_cast %22 : vector<1x8x128xf32> to vector<8x128xf32>
    %24 = arith.maximumf %18, %23 : vector<8x128xf32>
    %c4_22 = arith.constant 4 : index
    %c0_23 = arith.constant 0 : index
    %c0_24 = arith.constant 0 : index
    %25 = vector.load %arg2[%c4_22, %c0_23, %c0_24] : memref<8x4x128xf32, #tpu.memory_space<vmem>>, vector<1x4x128xf32>
    %26 = vector.shape_cast %25 : vector<1x4x128xf32> to vector<4x128xf32>
    %27 = arith.addf %21, %26 : vector<4x128xf32>
    %c5 = arith.constant 5 : index
    %c0_25 = arith.constant 0 : index
    %c0_26 = arith.constant 0 : index
    %28 = vector.load %arg1[%c5, %c0_25, %c0_26] : memref<8x8x128xf32, #tpu.memory_space<vmem>>, vector<1x8x128xf32>
    %29 = vector.shape_cast %28 : vector<1x8x128xf32> to vector<8x128xf32>
    %30 = arith.maximumf %24, %29 : vector<8x128xf32>
    %c5_27 = arith.constant 5 : index
    %c0_28 = arith.constant 0 : index
    %c0_29 = arith.constant 0 : index
    %31 = vector.load %arg2[%c5_27, %c0_28, %c0_29] : memref<8x4x128xf32, #tpu.memory_space<vmem>>, vector<1x4x128xf32>
    %32 = vector.shape_cast %31 : vector<1x4x128xf32> to vector<4x128xf32>
    %33 = arith.addf %27, %32 : vector<4x128xf32>
    %c6 = arith.constant 6 : index
    %c0_30 = arith.constant 0 : index
    %c0_31 = arith.constant 0 : index
    %34 = vector.load %arg1[%c6, %c0_30, %c0_31] : memref<8x8x128xf32, #tpu.memory_space<vmem>>, vector<1x8x128xf32>
    %35 = vector.shape_cast %34 : vector<1x8x128xf32> to vector<8x128xf32>
    %36 = arith.maximumf %30, %35 : vector<8x128xf32>
    %c6_32 = arith.constant 6 : index
    %c0_33 = arith.constant 0 : index
    %c0_34 = arith.constant 0 : index
    %37 = vector.load %arg2[%c6_32, %c0_33, %c0_34] : memref<8x4x128xf32, #tpu.memory_space<vmem>>, vector<1x4x128xf32>
    %38 = vector.shape_cast %37 : vector<1x4x128xf32> to vector<4x128xf32>
    %39 = arith.addf %33, %38 : vector<4x128xf32>
    %c7 = arith.constant 7 : index
    %c0_35 = arith.constant 0 : index
    %c0_36 = arith.constant 0 : index
    %40 = vector.load %arg1[%c7, %c0_35, %c0_36] : memref<8x8x128xf32, #tpu.memory_space<vmem>>, vector<1x8x128xf32>
    %41 = vector.shape_cast %40 : vector<1x8x128xf32> to vector<8x128xf32>
    %42 = arith.maximumf %36, %41 : vector<8x128xf32>
    %c7_37 = arith.constant 7 : index
    %c0_38 = arith.constant 0 : index
    %c0_39 = arith.constant 0 : index
    %43 = vector.load %arg2[%c7_37, %c0_38, %c0_39] : memref<8x4x128xf32, #tpu.memory_space<vmem>>, vector<1x4x128xf32>
    %44 = vector.shape_cast %43 : vector<1x4x128xf32> to vector<4x128xf32>
    %45 = arith.addf %39, %44 : vector<4x128xf32>
    %46 = vector.extract_strided_slice %45 {offsets = [3, 0], sizes = [1, 128], strides = [1, 1]} : vector<4x128xf32> to vector<1x128xf32>
    %cst = arith.constant 0.000000e+00 : f32
    %47 = vector.broadcast %cst : f32 to vector<1x128xf32>
    %48 = arith.cmpf ogt, %46, %47 : vector<1x128xf32>
    %cst_40 = arith.constant 1.000000e+00 : f32
    %49 = vector.broadcast %cst_40 : f32 to vector<1x128xf32>
    %50 = arith.select %48, %46, %49 : vector<1x128xi1>, vector<1x128xf32>
    %cst_41 = arith.constant 1.000000e+00 : f32
    %51 = vector.broadcast %cst_41 : f32 to vector<1x128xf32>
    %52 = arith.divf %51, %50 : vector<1x128xf32>
    %cst_42 = arith.constant 0.000000e+00 : f32
    %53 = vector.shape_cast %48 : vector<1x128xi1> to vector<1x128xi1>
    %54 = vector.broadcast %53 : vector<1x128xi1> to vector<8x128xi1>
    %55 = vector.broadcast %cst_42 : f32 to vector<8x128xf32>
    %56 = arith.select %54, %42, %55 : vector<8x128xi1>, vector<8x128xf32>
    %c0_43 = arith.constant 0 : index
    %c0_44 = arith.constant 0 : index
    %57 = vector.load %arg3[%c0_43, %c0_44] : memref<8x128xf32, #tpu.memory_space<vmem>>, vector<8x128xf32>
    tpu.vector_store %arg3[%c0_43, %c0_44], %56 {strides = array<i32>} : memref<8x128xf32, #tpu.memory_space<vmem>>, vector<8x128xf32>,
    %58 = vector.extract_strided_slice %45 {offsets = [0, 0], sizes = [3, 128], strides = [1, 1]} : vector<4x128xf32> to vector<3x128xf32>
    %59 = vector.broadcast %52 : vector<1x128xf32> to vector<3x128xf32>
    %60 = arith.mulf %58, %59 : vector<3x128xf32>
    %c0_45 = arith.constant 0 : index
    %c0_46 = arith.constant 0 : index
    %61 = vector.load %arg4[%c0_45, %c0_46] : memref<4x128xf32, #tpu.memory_space<vmem>>, vector<3x128xf32>
    tpu.vector_store %arg4[%c0_45, %c0_46], %60 {strides = array<i32>} : memref<4x128xf32, #tpu.memory_space<vmem>>, vector<3x128xf32>,
    %c3_47 = arith.constant 3 : index
    %c0_48 = arith.constant 0 : index
    %62 = vector.load %arg4[%c3_47, %c0_48] : memref<4x128xf32, #tpu.memory_space<vmem>>, vector<1x128xf32>
    tpu.vector_store %arg4[%c3_47, %c0_48], %46 {strides = array<i32>} : memref<4x128xf32, #tpu.memory_space<vmem>>, vector<1x128xf32>,
    return
  }
  func.func @transform_0(%arg0: i32) -> (i32, i32, i32) {
    %c0_i32 = arith.constant 0 : i32
    %c0_i32_0 = arith.constant 0 : i32
    %c0_i32_1 = arith.constant 0 : i32
    return %c0_i32, %c0_i32_0, %arg0 : i32, i32, i32
  }
  func.func @transform_1(%arg0: i32) -> (i32, i32, i32) {
    %c0_i32 = arith.constant 0 : i32
    %c0_i32_0 = arith.constant 0 : i32
    %c0_i32_1 = arith.constant 0 : i32
    return %c0_i32, %c0_i32_0, %arg0 : i32, i32, i32
  }
  func.func @transform_2(%arg0: i32) -> (i32, i32) {
    %c0_i32 = arith.constant 0 : i32
    %c0_i32_0 = arith.constant 0 : i32
    return %c0_i32, %arg0 : i32, i32
  }
  func.func @transform_3(%arg0: i32) -> (i32, i32) {
    %c0_i32 = arith.constant 0 : i32
    %c0_i32_0 = arith.constant 0 : i32
    return %c0_i32, %arg0 : i32, i32
  }
}

</mosaic_0001>

<bundles_post_ra>
// kernel: tpu_custom_call.1
= control target key start
LH: loop header
LB: loop body
LE: loop exit
PB: predicated region body
PF: predicated region fallthrough
CT: control target
= control target key end

     0   :  { %9 = vsyncpa [#allocation3], 0  ;;  %s309_s0 = inlined_call_operand.hbm [shape: f32[8,8,256], index: 0, kind: input, shape index: {}]   ;;  %s310_s1 = inlined_call_operand.hbm [shape: f32[8,4,256], index: 1, kind: input, shape index: {}]   ;;  %s311_s2 = inlined_call_operand.hbm [shape: f32[8,128], index: 2, kind: output, shape index: {0}]   ;;  %s312_s3 = inlined_call_operand.hbm [shape: f32[4,128], index: 3, kind: output, shape index: {1}]  }
   0x1   :  { %10 = vsyncpa [#allocation6], 0 }
   0x2   :  { %11 = vsyncpa [#allocation4], 0 }
   0x3   :  { %12 = vsyncpa [#allocation9], 0  ;;  %s17_s14 = sshll.u32 %s309_s0, 4  ;;  %s267_s15 = smov [#allocation2]   ;;  %s18_s14 = int_to_ptr.hbm [resolvable:$true] %s17_s14 }
   0x4   :  { %s19_s16 = sshll.u32 %s267_s15, 4  ;;  %s268_s17 = smov 256   ;;  %s20_s16 = int_to_ptr.vmem [resolvable:$true] %s19_s16 }
   0x5   :  { %s269_s18 = smov 128   ;;  %s270_s19 = smov 8  }
   0x6   :  { %25 = dma.hbm_to_vmem [thread:$0]  %s18_s14, 1024, %s20_s16, [#allocation3], %s268_s17, %s269_s18, %s270_s19  }
   0x7   :  { %s30_s22 = sshll.u32 %s310_s1, 4  ;;  %s271_s23 = smov [#allocation5]   ;;  %s31_s22 = int_to_ptr.hbm [resolvable:$true] %s30_s22 }
   0x8   :  { %s32_s24 = sshll.u32 %s271_s23, 4  ;;  %s272_s25 = smov 64   ;;  %s33_s24 = int_to_ptr.vmem [resolvable:$true] %s32_s24 }
   0x9   :  { %s273_s26 = smov 4  }
   0xa   :  { %38 = dma.hbm_to_vmem [thread:$0]  %s31_s22, 512, %s33_s24, [#allocation6], %s269_s18, %s272_s25, %s273_s26  }
   0xb   :  { %259 = dma.done.wait [#allocation3], 1024  }
   0xc   :  { %260 = vsyncadd [#allocation3], 4294966272 }
   0xd   :  { %261 = dma.done.wait [#allocation6], 512  }
   0xe   :  { %262 = vsyncadd [#allocation6], 4294966784  ;;  %v47_v0 = vld [vmem:[#allocation2] sm:$0xff]  ;;  %v50_v2 = vld [vmem:[#allocation2 + $0x8] sm:$0xff]  ;;  %v274_v31 = vmov 0   ;;  %s275_s0 = smov [#allocation7]  }
   0xf   :  { %v48_v1 = vld [vmem:[#allocation5] sm:$0xf]  ;;  %v51_v3 = vmax.f32 %v47_v0, %v50_v2  ;;  %v53_v4 = vld [vmem:[#allocation5 + $0x4] sm:$0xf]  ;;  %v56_v5 = vld [vmem:[#allocation2 + $0x10] sm:$0xff]  ;;  %s122_s1 = sshll.u32 %s275_s0, 4  ;;  %s123_s1 = int_to_ptr.vmem [resolvable:$true] %s122_s1 }
  0x10   :  { %v59_v6 = vld [vmem:[#allocation5 + $0x8] sm:$0xf]  ;;  %v54_v7 = vadd.f32 %v53_v4, %v48_v1  ;;  %v62_v8 = vld [vmem:[#allocation2 + $0x18] sm:$0xff]  ;;  %v65_v10 = vld [vmem:[#allocation5 + $0xc] sm:$0xf]  ;;  %s124_s29 = sshll.u32 %s311_s2, 4  ;;  %s125_s29 = int_to_ptr.hbm [resolvable:$true] %s124_s29 }
  0x11   :  { %v57_v9 = vmax.f32 %v51_v3, %v56_v5  ;;  %v68_v12 = vld [vmem:[#allocation2 + $0x20] sm:$0xff]  ;;  %v71_v14 = vld [vmem:[#allocation5 + $0x10] sm:$0xf]  ;;  %v74_v16 = vld [vmem:[#allocation2 + $0x28] sm:$0xff]  ;;  %s276_s2 = smov [#allocation8]   ;;  %s135_s6 = sshll.u32 %s312_s3, 4  ;;  %s136_s6 = int_to_ptr.hbm [resolvable:$true] %s135_s6 }
  0x12   :  { %v60_v11 = vadd.f32 %v59_v6, %v54_v7  ;;  %v77_v18 = vld [vmem:[#allocation5 + $0x14] sm:$0xf]  ;;  %v83_v21 = vld [vmem:[#allocation5 + $0x18] sm:$0xf]  ;;  %v89_v24 = vld [vmem:[#allocation5 + $0x1c] sm:$0xf] }
  0x13   :  { %v63_v13 = vmax.f32 %v57_v9, %v62_v8  ;;  %v80_v23 = vld [vmem:[#allocation2 + $0x30] sm:$0xff]  ;;  %v86_v27 = vld [vmem:[#allocation2 + $0x38] sm:$0xff]  ;;  %s133_s30 = sshll.u32 %s276_s2, 4  ;;  %s134_s30 = int_to_ptr.vmem [resolvable:$true] %s133_s30 }
  0x14   :  { %v66_v15 = vadd.f32 %v65_v10, %v60_v11 }
  0x15   :  { %v69_v17 = vmax.f32 %v63_v13, %v68_v12 }
  0x16   :  { %v72_v19 = vadd.f32 %v71_v14, %v66_v15 }
  0x17   :  { %v75_v20 = vmax.f32 %v69_v17, %v74_v16 }
  0x18   :  { %v78_v22 = vadd.f32 %v77_v18, %v72_v19 }
  0x19   :  { %v81_v26 = vmax.f32 %v75_v20, %v80_v23 }
  0x1a   :  { %v84_v25 = vadd.f32 %v83_v21, %v78_v22 }
  0x1b   :  { %v87_v29 = vmax.f32 %v81_v26, %v86_v27 }
  0x1c   :  { %v90_v28 = vadd.f32 %v89_v24, %v84_v25 }
  0x1e   :  { %vm91_vm0 = vcmp.gt.f32.partialorder %v90_v28, 0.0  ;;  %116 = vst [vmem:[#allocation8] sm:$0x8] %v90_v28 }
  0x1f   :  { %v92_v30 = vsel %vm91_vm0, %v90_v28, 1.0  ;;  %v108_v32 = vsel %vm91_vm0, 1, %v274_v31 }
  0x20   :  { %161 = vrcp.f32 %v92_v30  ;;  %v109_v33 = vperm.slane %v108_v32, 3  ;;  %v104_v37 = vand.u32 2147483648, %v92_v30  ;;  %vm98_vm2 = vweird.f32 %v92_v30 }
  0x21   :  { %v102_v39 = vand.u32 2147483647, %v92_v30 }
  0x22   :  { %vm110_vm1 = vcmp.eq.s32.totalorder %v109_v33, 1  ;;  %v105_v41 = vor.u32 1.1754944e-38, %v104_v37 }
  0x23   :  { %v111_v34 = vsel %vm110_vm1, %v87_v29, 0.0  ;;  %vm103_vm5 = vcmp.eq.f32.partialorder %v102_v39, 8.507059e+37 }
  0x24   :  { %112 = vst [vmem:[#allocation7] sm:$0xff] %v111_v34 }
  0x25   :  { %127 = dma.vmem_to_hbm [thread:$0]  %s123_s1, 128, %s125_s29, [#allocation4]  }
  0x26   :  { %v162_v35 = vpop.eup %161 }
  0x27   :  { %v94_v36 = vmul.f32 %v162_v35, %v92_v30  ;;  %vm99_vm3 = vweird.f32 %v162_v35 }
  0x28   :  { %vm100_vm4 = vmor %vm98_vm2, %vm99_vm3 }
  0x29   :  { %v95_v38 = vsub.f32 1.0, %v94_v36 }
  0x2b   :  { %v96_v40 = vmul.f32 %v162_v35, %v95_v38 }
  0x2d   :  { %v97_v42 = vadd.f32 %v162_v35, %v96_v40 }
  0x2f   :  { %v101_v43 = vsel %vm100_vm4, %v162_v35, %v97_v42 }
  0x30   :  { %v106_v44 = vsel %vm103_vm5, %v105_v41, %v101_v43 }
  0x31   :  { %v113_v45 = vperm.slane %v106_v44, 3 }
  0x33   :  { %v114_v46 = vmul.f32 %v113_v45, %v90_v28 }
  0x35   :  { %115 = vst [vmem:[#allocation8] sm:$0x7] %v114_v46 }
  0x36   :  { %138 = dma.vmem_to_hbm [thread:$0]  %s134_s30, 64, %s136_s6, [#allocation9]  }
  0x37   :  { %263 = dma.done.wait [#allocation4], 128  }
  0x38   :  { %264 = vsyncadd [#allocation4], 4294967168 }
  0x39   :  { %265 = dma.done.wait [#allocation9], 64  }
  0x3a   :  { %266 = vsyncadd [#allocation9], 4294967232 }
  0x3b   :  { %147 = vsyncpa [#allocation3], 1 }
  0x3c   :  { %148 = vsyncpa [#allocation6], 1 }
  0x3d   :  { %149 = vsyncpa [#allocation4], 1 }
  0x3e   :  { %150 = vsyncpa [#allocation9], 1 }

</bundles_post_ra>
